<compile_context>
chip_gen: v6e
topology: v6e:2x2x1
jax: 0.10.0
libtpu: 0.0.40
codegen_flags: <defaults>
</compile_context>

<pallas_src>
import functools

import jax
import jax.numpy as jnp
import numpy as np
from jax.experimental import pallas as pl
from jax.experimental.pallas import tpu as pltpu

WIN = 7
K1 = 0.01
K2 = 0.03


def _choose_bt(B, H, W, Hp, Wp, vmem_budget=40 * 1024 * 1024):
    """Images per grid step: largest divisor of B that fits a conservative
    per-step VMEM budget (valid for v5e/v6e/v7x) while keeping >= 2 grid
    steps so both v7x TensorCores get work on the 'parallel' axis."""

    def footprint(bt):
        return (2 * 2 * bt * H * W * 4          # x, y blocks, double-buffered f32
                + 5 * bt * H * W * 2            # bf16 map operands (xx/yy/xy + casts)
                + 5 * bt * H * Wp * (4 + 2)     # horizontal-pass results f32 + bf16
                + 12 * Hp * Wp * 4)             # per-image filtered maps + epilogue

    best = 1
    for d in range(1, min(B, 4) + 1):
        if B % d:
            continue
        if B > 1 and B // d < 2:   # keep >= 2 parallel grid steps (2 TCs on v7x)
            continue
        if footprint(d) > vmem_budget:
            continue
        best = d
    return best


def _ssim_kernel(x_ref, y_ref, v_ref, hm_ref, c1_ref, c2_ref, o_ref, *, win, bt):
    Hb = x_ref.shape[1]            # padded image height
    W = x_ref.shape[2]
    n = bt * Hb

    x = x_ref[...].reshape(n, W)   # f32, tile-aligned view (Hb % 16 == 0)
    y = y_ref[...].reshape(n, W)

    hm = hm_ref[...]               # (W, Wp)  bf16, 0/1 band
    v = v_ref[...]                 # (Hp, Hb) bf16, 0/1 band

    # Horizontal "valid" box pass on the MXU: one bf16 matmul per map over all
    # bt images at once.  Squares/cross terms are formed in f32, then cast.
    def hpass(m):                  # (n, W) f32 -> (n, Wp) f32 partial sums
        return jnp.dot(m.astype(jnp.bfloat16), hm,
                       preferred_element_type=jnp.float32)

    hx = hpass(x)
    hy = hpass(y)
    hxx = hpass(x * x)
    hyy = hpass(y * y)
    hxy = hpass(x * y)

    c1 = c1_ref[...]               # (1, Wp) -- torch's (B,)-over-width broadcast
    c2 = c2_ref[...]
    np_ = float(win * win)
    inv_np = jnp.float32(1.0 / np_)
    cov_norm = jnp.float32(np_ / (np_ - 1.0))

    total = jnp.zeros((), jnp.float32)
    for b in range(bt):            # static unroll, bt <= 4
        lo, hi = b * Hb, (b + 1) * Hb

        # Vertical box pass on the MXU: per-image (Hp,Hb)@(Hb,Wp), no wasted
        # MACs; the 1/win^2 scale is applied in the f32 epilogue.
        def vpass(hmap):           # (Hb, Wp) -> (Hp, Wp) box mean
            return inv_np * jnp.dot(v, hmap[lo:hi].astype(jnp.bfloat16),
                                    preferred_element_type=jnp.float32)

        ux = vpass(hx)
        uy = vpass(hy)
        uxx = vpass(hxx)
        uyy = vpass(hyy)
        uxy = vpass(hxy)

        vx = cov_norm * (uxx - ux * ux)
        vy = cov_norm * (uyy - uy * uy)
        vxy = cov_norm * (uxy - ux * uy)

        a1 = 2.0 * ux * uy + c1
        a2 = 2.0 * vxy + c2
        b1 = ux * ux + uy * uy + c1
        b2 = vx + vy + c2
        # Exact f32 divide: bf16 matmul operands already spend the error
        # budget, and the divide is negligible next to the MXU work.
        s = (a1 * a2) / (b1 * b2)            # (Hp, Wp)
        total = total + jnp.sum(s)

    # One partial sum per grid step; each step owns its own output block
    # (grid axis is "parallel"), final mean happens in the wrapper.
    o_ref[...] = jnp.reshape(total, (1, 1, 1))


def ssim_loss(output, target, win_size=WIN, k1=K1, k2=K2):
    """1 - SSIM(output, target), matching the PyTorch module's forward."""
    # --- glue: convert() ---------------------------------------------------
    def _complex_abs(a):  # (B, H, W, 2) -> (B, H, W)
        return jnp.sqrt(jnp.sum(a.astype(jnp.float32) ** 2, axis=-1))

    if output.ndim == 4:
        output = _complex_abs(output)
    if target.ndim == 4:
        target = _complex_abs(target)
    output = output.astype(jnp.float32)
    target = target.astype(jnp.float32)

    B, H, W = output.shape
    assert H >= win_size and W >= win_size, "image smaller than SSIM window"
    Hp, Wp = H - win_size + 1, W - win_size + 1
    # PyTorch broadcasts the (B,) C1/C2 vector against the trailing width dim
    # Wp; only legal when B == Wp or B == 1 (faithful to the module).
    assert B == Wp or B == 1, "SSIM C1/C2 broadcast requires B == W-win+1 or B == 1"

    # per-batch max of target -> data_range (B,), computed BEFORE any padding
    data_range = jnp.max(target.reshape(B, -1), axis=1)
    C1 = (k1 * data_range) ** 2
    C2 = (k2 * data_range) ** 2
    c1_row = jnp.broadcast_to(C1, (1, Wp)).astype(jnp.float32)
    c2_row = jnp.broadcast_to(C2, (1, Wp)).astype(jnp.float32)

    # Pad H to a multiple of 16 so f32/bf16 reshapes and per-image sublane
    # slices in the kernel are tile-aligned views (no relayout copies).
    H_pad = -(-H // 16) * 16
    if H_pad != H:
        pad = ((0, 0), (0, H_pad - H), (0, 0))
        output = jnp.pad(output, pad)
        target = jnp.pad(target, pad)

    # Banded "valid" box-filter matrices with exact 0/1 entries (exact in
    # bf16); the 1/win^2 scale is folded into the kernel epilogue.  The band
    # never touches the zero-padded rows (row < Hp-1+win = H), so padding is
    # semantics-neutral.
    p = jnp.arange(Hp)[:, None]
    h = jnp.arange(H_pad)[None, :]
    V = ((h >= p) & (h < p + win_size)).astype(jnp.bfloat16)         # (Hp, H_pad)
    wj = jnp.arange(W)[:, None]
    wq = jnp.arange(Wp)[None, :]
    Hm = ((wj >= wq) & (wj < wq + win_size)).astype(jnp.bfloat16)    # (W, Wp)

    bt = _choose_bt(B, H_pad, W, Hp, Wp)
    G = B // bt

    kernel = functools.partial(_ssim_kernel, win=win_size, bt=bt)

    flops = 2 * 5 * B * (H_pad * W * Wp + Hp * H_pad * Wp) + 30 * B * Hp * Wp
    bytes_accessed = (2 * B * H_pad * W * 4            # x, y
                      + (Hp * H_pad + W * Wp) * 2      # band matrices (bf16)
                      + 2 * Wp * 4 + G * 4)            # C rows + partial sums

    partial_sums = pl.pallas_call(
        kernel,
        out_shape=jax.ShapeDtypeStruct((G, 1, 1), jnp.float32),
        grid_spec=pltpu.PrefetchScalarGridSpec(
            num_scalar_prefetch=0,
            grid=(G,),
            in_specs=[
                pl.BlockSpec((bt, H_pad, W), lambda g: (g, 0, 0)),
                pl.BlockSpec((bt, H_pad, W), lambda g: (g, 0, 0)),
                pl.BlockSpec((Hp, H_pad), lambda g: (0, 0)),
                pl.BlockSpec((W, Wp), lambda g: (0, 0)),
                pl.BlockSpec((1, Wp), lambda g: (0, 0)),
                pl.BlockSpec((1, Wp), lambda g: (0, 0)),
            ],
            out_specs=pl.BlockSpec((1, 1, 1), lambda g: (g, 0, 0)),
        ),
        compiler_params=pltpu.CompilerParams(
            dimension_semantics=("parallel",),
            vmem_limit_bytes=64 * 1024 * 1024),
        cost_estimate=pl.CostEstimate(
            flops=int(flops),
            transcendentals=int(B * Hp * Wp),
            bytes_accessed=int(bytes_accessed)),
    )(output, target, V, Hm, c1_row, c2_row)

    total = jnp.sum(partial_sums)
    return 1.0 - total / jnp.float32(B * Hp * Wp)


def _ssim_reference(output, target, win_size=WIN, k1=K1, k2=K2):
    """Pure-JAX reference mirroring the PyTorch code 1:1 (for validation)."""
    B = target.shape[0]
    X = output[:, None].astype(jnp.float32)  # (B,1,H,W)
    Y = target[:, None].astype(jnp.float32)
    data_range = jnp.max(target.reshape(B, -1), axis=1)
    C1 = (k1 * data_range) ** 2
    C2 = (k2 * data_range) ** 2
    w = jnp.ones((1, 1, win_size, win_size), jnp.float32) / float(win_size ** 2)
    conv = lambda a: jax.lax.conv_general_dilated(
        a, w, (1, 1), "VALID", dimension_numbers=("NCHW", "OIHW", "NCHW"),
        precision=jax.lax.Precision.HIGHEST)
    NP = win_size ** 2
    cov_norm = NP / (NP - 1)
    ux, uy = conv(X), conv(Y)
    uxx, uyy, uxy = conv(X * X), conv(Y * Y), conv(X * Y)
    vx = cov_norm * (uxx - ux * ux)
    vy = cov_norm * (uyy - uy * uy)
    vxy = cov_norm * (uxy - ux * uy)
    A1 = 2 * ux * uy + C1
    A2 = 2 * vxy + C2
    B1 = ux ** 2 + uy ** 2 + C1
    B2 = vx + vy + C2
    S = A1 * A2 / (B1 * B2)
    return 1 - S.mean()


if __name__ == "__main__":
    # B must equal Wp = W - 6 (or be 1) for the module's broadcast to be legal,
    # exactly as in PyTorch.  B=2, H=16, W=8 -> conv output (2, 1, 10, 2).
    B, H, W = 2, 16, 8
    key = jax.random.PRNGKey(0)
    k_out, k_tgt = jax.random.split(key)
    output = jax.random.uniform(k_out, (B, H, W), jnp.float32)
    target = jax.random.uniform(k_tgt, (B, H, W), jnp.float32)

    loss = jax.block_until_ready(ssim_loss(output, target))
    ref = jax.block_until_ready(_ssim_reference(output, target))

    # Tolerance re-budgeted for the native-bf16 MXU path (per perf review):
    # bf16 rounding of the second-moment maps is amplified by the
    # uxx - ux*ux cancellation; the divide itself is exact f32.
    np.testing.assert_allclose(np.asarray(loss), np.asarray(ref),
                               rtol=5e-3, atol=5e-3)
    print("KERNEL_OK")
</pallas_src>

<mosaic_0001>
module attributes {stable_mosaic.version = 11 : i64} {
  func.func @_ssim_kernel(%arg0: i32, %arg1: memref<1x16x8xf32, #tpu.memory_space<vmem>>, %arg2: memref<1x16x8xf32, #tpu.memory_space<vmem>>, %arg3: memref<10x16xbf16, #tpu.memory_space<vmem>>, %arg4: memref<8x2xbf16, #tpu.memory_space<vmem>>, %arg5: memref<1x2xf32, #tpu.memory_space<vmem>>, %arg6: memref<1x2xf32, #tpu.memory_space<vmem>>, %arg7: memref<1x1x1xf32, #tpu.memory_space<vmem>>) attributes {dimension_semantics = [#tpu.dimension_semantics<parallel>], iteration_bounds = array<i64: 2>, scalar_prefetch = 0 : i64, scratch_operands = 0 : i64, tpu.core_type = #tpu.core_type<tc>, window_params = [{transform_indices = @transform_0, window_bounds = array<i64: 1, 16, 8>}, {transform_indices = @transform_1, window_bounds = array<i64: 1, 16, 8>}, {pipeline_mode = #tpu.pipeline_mode<synchronous>, transform_indices = @transform_2, window_bounds = array<i64: 10, 16>}, {pipeline_mode = #tpu.pipeline_mode<synchronous>, transform_indices = @transform_3, window_bounds = array<i64: 8, 2>}, {pipeline_mode = #tpu.pipeline_mode<synchronous>, transform_indices = @transform_4, window_bounds = array<i64: 1, 2>}, {pipeline_mode = #tpu.pipeline_mode<synchronous>, transform_indices = @transform_5, window_bounds = array<i64: 1, 2>}, {transform_indices = @transform_6, window_bounds = array<i64: 1, 1, 1>}]} {
    %c0 = arith.constant 0 : index
    %c0_0 = arith.constant 0 : index
    %c0_1 = arith.constant 0 : index
    %0 = vector.load %arg1[%c0, %c0_0, %c0_1] : memref<1x16x8xf32, #tpu.memory_space<vmem>>, vector<1x16x8xf32>
    %1 = vector.shape_cast %0 : vector<1x16x8xf32> to vector<16x8xf32>
    %c0_2 = arith.constant 0 : index
    %c0_3 = arith.constant 0 : index
    %c0_4 = arith.constant 0 : index
    %2 = vector.load %arg2[%c0_2, %c0_3, %c0_4] : memref<1x16x8xf32, #tpu.memory_space<vmem>>, vector<1x16x8xf32>
    %3 = vector.shape_cast %2 : vector<1x16x8xf32> to vector<16x8xf32>
    %c0_5 = arith.constant 0 : index
    %c0_6 = arith.constant 0 : index
    %4 = vector.load %arg4[%c0_5, %c0_6] : memref<8x2xbf16, #tpu.memory_space<vmem>>, vector<8x2xbf16>
    %c0_7 = arith.constant 0 : index
    %c0_8 = arith.constant 0 : index
    %5 = vector.load %arg3[%c0_7, %c0_8] : memref<10x16xbf16, #tpu.memory_space<vmem>>, vector<10x16xbf16>
    %6 = arith.truncf %1 : vector<16x8xf32> to vector<16x8xbf16>
    %cst = arith.constant dense<0.000000e+00> : vector<16x2xf32>
    %7 = tpu.matmul %6, %4, %cst {dimension_numbers = #tpu.dot_dimension_numbers<[1], [0], [0], [1], [0, 0, 1, 1], [], []>} : vector<16x8xbf16>, vector<8x2xbf16>, vector<16x2xf32> -> vector<16x2xf32>
    %8 = arith.truncf %3 : vector<16x8xf32> to vector<16x8xbf16>
    %cst_9 = arith.constant dense<0.000000e+00> : vector<16x2xf32>
    %9 = tpu.matmul %8, %4, %cst_9 {dimension_numbers = #tpu.dot_dimension_numbers<[1], [0], [0], [1], [0, 0, 1, 1], [], []>} : vector<16x8xbf16>, vector<8x2xbf16>, vector<16x2xf32> -> vector<16x2xf32>
    %10 = arith.mulf %1, %1 : vector<16x8xf32>
    %11 = arith.truncf %10 : vector<16x8xf32> to vector<16x8xbf16>
    %cst_10 = arith.constant dense<0.000000e+00> : vector<16x2xf32>
    %12 = tpu.matmul %11, %4, %cst_10 {dimension_numbers = #tpu.dot_dimension_numbers<[1], [0], [0], [1], [0, 0, 1, 1], [], []>} : vector<16x8xbf16>, vector<8x2xbf16>, vector<16x2xf32> -> vector<16x2xf32>
    %13 = arith.mulf %3, %3 : vector<16x8xf32>
    %14 = arith.truncf %13 : vector<16x8xf32> to vector<16x8xbf16>
    %cst_11 = arith.constant dense<0.000000e+00> : vector<16x2xf32>
    %15 = tpu.matmul %14, %4, %cst_11 {dimension_numbers = #tpu.dot_dimension_numbers<[1], [0], [0], [1], [0, 0, 1, 1], [], []>} : vector<16x8xbf16>, vector<8x2xbf16>, vector<16x2xf32> -> vector<16x2xf32>
    %16 = arith.mulf %1, %3 : vector<16x8xf32>
    %17 = arith.truncf %16 : vector<16x8xf32> to vector<16x8xbf16>
    %cst_12 = arith.constant dense<0.000000e+00> : vector<16x2xf32>
    %18 = tpu.matmul %17, %4, %cst_12 {dimension_numbers = #tpu.dot_dimension_numbers<[1], [0], [0], [1], [0, 0, 1, 1], [], []>} : vector<16x8xbf16>, vector<8x2xbf16>, vector<16x2xf32> -> vector<16x2xf32>
    %c0_13 = arith.constant 0 : index
    %c0_14 = arith.constant 0 : index
    %19 = vector.load %arg5[%c0_13, %c0_14] : memref<1x2xf32, #tpu.memory_space<vmem>>, vector<1x2xf32>
    %c0_15 = arith.constant 0 : index
    %c0_16 = arith.constant 0 : index
    %20 = vector.load %arg6[%c0_15, %c0_16] : memref<1x2xf32, #tpu.memory_space<vmem>>, vector<1x2xf32>
    %21 = arith.truncf %7 : vector<16x2xf32> to vector<16x2xbf16>
    %cst_17 = arith.constant dense<0.000000e+00> : vector<10x2xf32>
    %22 = tpu.matmul %5, %21, %cst_17 {dimension_numbers = #tpu.dot_dimension_numbers<[1], [0], [0], [1], [0, 0, 1, 1], [], []>} : vector<10x16xbf16>, vector<16x2xbf16>, vector<10x2xf32> -> vector<10x2xf32>
    %cst_18 = arith.constant 0.0204081628 : f32
    %23 = vector.broadcast %cst_18 : f32 to vector<10x2xf32>
    %24 = arith.mulf %23, %22 : vector<10x2xf32>
    %25 = arith.truncf %9 : vector<16x2xf32> to vector<16x2xbf16>
    %cst_19 = arith.constant dense<0.000000e+00> : vector<10x2xf32>
    %26 = tpu.matmul %5, %25, %cst_19 {dimension_numbers = #tpu.dot_dimension_numbers<[1], [0], [0], [1], [0, 0, 1, 1], [], []>} : vector<10x16xbf16>, vector<16x2xbf16>, vector<10x2xf32> -> vector<10x2xf32>
    %cst_20 = arith.constant 0.0204081628 : f32
    %27 = vector.broadcast %cst_20 : f32 to vector<10x2xf32>
    %28 = arith.mulf %27, %26 : vector<10x2xf32>
    %29 = arith.truncf %12 : vector<16x2xf32> to vector<16x2xbf16>
    %cst_21 = arith.constant dense<0.000000e+00> : vector<10x2xf32>
    %30 = tpu.matmul %5, %29, %cst_21 {dimension_numbers = #tpu.dot_dimension_numbers<[1], [0], [0], [1], [0, 0, 1, 1], [], []>} : vector<10x16xbf16>, vector<16x2xbf16>, vector<10x2xf32> -> vector<10x2xf32>
    %cst_22 = arith.constant 0.0204081628 : f32
    %31 = vector.broadcast %cst_22 : f32 to vector<10x2xf32>
    %32 = arith.mulf %31, %30 : vector<10x2xf32>
    %33 = arith.truncf %15 : vector<16x2xf32> to vector<16x2xbf16>
    %cst_23 = arith.constant dense<0.000000e+00> : vector<10x2xf32>
    %34 = tpu.matmul %5, %33, %cst_23 {dimension_numbers = #tpu.dot_dimension_numbers<[1], [0], [0], [1], [0, 0, 1, 1], [], []>} : vector<10x16xbf16>, vector<16x2xbf16>, vector<10x2xf32> -> vector<10x2xf32>
    %cst_24 = arith.constant 0.0204081628 : f32
    %35 = vector.broadcast %cst_24 : f32 to vector<10x2xf32>
    %36 = arith.mulf %35, %34 : vector<10x2xf32>
    %37 = arith.truncf %18 : vector<16x2xf32> to vector<16x2xbf16>
    %cst_25 = arith.constant dense<0.000000e+00> : vector<10x2xf32>
    %38 = tpu.matmul %5, %37, %cst_25 {dimension_numbers = #tpu.dot_dimension_numbers<[1], [0], [0], [1], [0, 0, 1, 1], [], []>} : vector<10x16xbf16>, vector<16x2xbf16>, vector<10x2xf32> -> vector<10x2xf32>
    %cst_26 = arith.constant 0.0204081628 : f32
    %39 = vector.broadcast %cst_26 : f32 to vector<10x2xf32>
    %40 = arith.mulf %39, %38 : vector<10x2xf32>
    %41 = arith.mulf %24, %24 : vector<10x2xf32>
    %42 = arith.subf %32, %41 : vector<10x2xf32>
    %cst_27 = arith.constant 1.02083337 : f32
    %43 = vector.broadcast %cst_27 : f32 to vector<10x2xf32>
    %44 = arith.mulf %43, %42 : vector<10x2xf32>
    %45 = arith.mulf %28, %28 : vector<10x2xf32>
    %46 = arith.subf %36, %45 : vector<10x2xf32>
    %cst_28 = arith.constant 1.02083337 : f32
    %47 = vector.broadcast %cst_28 : f32 to vector<10x2xf32>
    %48 = arith.mulf %47, %46 : vector<10x2xf32>
    %49 = arith.mulf %24, %28 : vector<10x2xf32>
    %50 = arith.subf %40, %49 : vector<10x2xf32>
    %cst_29 = arith.constant 1.02083337 : f32
    %51 = vector.broadcast %cst_29 : f32 to vector<10x2xf32>
    %52 = arith.mulf %51, %50 : vector<10x2xf32>
    %cst_30 = arith.constant 2.000000e+00 : f32
    %53 = vector.broadcast %cst_30 : f32 to vector<10x2xf32>
    %54 = arith.mulf %53, %24 : vector<10x2xf32>
    %55 = arith.mulf %54, %28 : vector<10x2xf32>
    %56 = vector.broadcast %19 : vector<1x2xf32> to vector<10x2xf32>
    %57 = arith.addf %55, %56 : vector<10x2xf32>
    %cst_31 = arith.constant 2.000000e+00 : f32
    %58 = vector.broadcast %cst_31 : f32 to vector<10x2xf32>
    %59 = arith.mulf %58, %52 : vector<10x2xf32>
    %60 = vector.broadcast %20 : vector<1x2xf32> to vector<10x2xf32>
    %61 = arith.addf %59, %60 : vector<10x2xf32>
    %62 = arith.mulf %24, %24 : vector<10x2xf32>
    %63 = arith.mulf %28, %28 : vector<10x2xf32>
    %64 = arith.addf %62, %63 : vector<10x2xf32>
    %65 = vector.broadcast %19 : vector<1x2xf32> to vector<10x2xf32>
    %66 = arith.addf %64, %65 : vector<10x2xf32>
    %67 = arith.addf %44, %48 : vector<10x2xf32>
    %68 = vector.broadcast %20 : vector<1x2xf32> to vector<10x2xf32>
    %69 = arith.addf %67, %68 : vector<10x2xf32>
    %70 = arith.mulf %57, %61 : vector<10x2xf32>
    %71 = arith.mulf %66, %69 : vector<10x2xf32>
    %72 = arith.divf %70, %71 : vector<10x2xf32>
    %73 = vector.shape_cast %72 : vector<10x2xf32> to vector<1x10x2xf32>
    %cst_32 = arith.constant dense<0.000000e+00> : vector<1xf32>
    %74 = vector.multi_reduction <add>, %73, %cst_32 [1, 2] : vector<1x10x2xf32> to vector<1xf32>
    %75 = vector.shape_cast %74 : vector<1xf32> to vector<1x1x1xf32>
    %76 = vector.extract %75[0, 0, 0] : f32 from vector<1x1x1xf32>
    %cst_33 = arith.constant 0.000000e+00 : f32
    %77 = arith.addf %cst_33, %76 : f32
    %78 = vector.broadcast %77 : f32 to vector<1x1x1xf32>
    %c0_34 = arith.constant 0 : index
    %c0_35 = arith.constant 0 : index
    %c0_36 = arith.constant 0 : index
    %79 = vector.load %arg7[%c0_34, %c0_35, %c0_36] : memref<1x1x1xf32, #tpu.memory_space<vmem>>, vector<1x1x1xf32>
    tpu.vector_store %arg7[%c0_34, %c0_35, %c0_36], %78 {strides = array<i32>} : memref<1x1x1xf32, #tpu.memory_space<vmem>>, vector<1x1x1xf32>,
    return
  }
  func.func @transform_0(%arg0: i32) -> (i32, i32, i32) {
    %c0_i32 = arith.constant 0 : i32
    %c0_i32_0 = arith.constant 0 : i32
    %c0_i32_1 = arith.constant 0 : i32
    return %arg0, %c0_i32, %c0_i32_0 : i32, i32, i32
  }
  func.func @transform_1(%arg0: i32) -> (i32, i32, i32) {
    %c0_i32 = arith.constant 0 : i32
    %c0_i32_0 = arith.constant 0 : i32
    %c0_i32_1 = arith.constant 0 : i32
    return %arg0, %c0_i32, %c0_i32_0 : i32, i32, i32
  }
  func.func @transform_2(%arg0: i32) -> (i32, i32) {
    %c0_i32 = arith.constant 0 : i32
    %c0_i32_0 = arith.constant 0 : i32
    %c0_i32_1 = arith.constant 0 : i32
    return %c0_i32, %c0_i32_0 : i32, i32
  }
  func.func @transform_3(%arg0: i32) -> (i32, i32) {
    %c0_i32 = arith.constant 0 : i32
    %c0_i32_0 = arith.constant 0 : i32
    %c0_i32_1 = arith.constant 0 : i32
    return %c0_i32, %c0_i32_0 : i32, i32
  }
  func.func @transform_4(%arg0: i32) -> (i32, i32) {
    %c0_i32 = arith.constant 0 : i32
    %c0_i32_0 = arith.constant 0 : i32
    %c0_i32_1 = arith.constant 0 : i32
    return %c0_i32, %c0_i32_0 : i32, i32
  }
  func.func @transform_5(%arg0: i32) -> (i32, i32) {
    %c0_i32 = arith.constant 0 : i32
    %c0_i32_0 = arith.constant 0 : i32
    %c0_i32_1 = arith.constant 0 : i32
    return %c0_i32, %c0_i32_0 : i32, i32
  }
  func.func @transform_6(%arg0: i32) -> (i32, i32, i32) {
    %c0_i32 = arith.constant 0 : i32
    %c0_i32_0 = arith.constant 0 : i32
    %c0_i32_1 = arith.constant 0 : i32
    return %arg0, %c0_i32, %c0_i32_0 : i32, i32, i32
  }
}

</mosaic_0001>

<bundles_post_ra>
// kernel: tpu_custom_call.1
= control target key start
LH: loop header
LB: loop body
LE: loop exit
PB: predicated region body
PF: predicated region fallthrough
CT: control target
= control target key end

     0   :  { %s1044_s21 = smov 0   ;;  %s1120_s0 = inlined_call_operand.vmem [shape: f32[2,16,8], index: 0, kind: input, shape index: {}]   ;;  %s1121_s1 = inlined_call_operand.vmem [shape: f32[2,16,8], index: 1, kind: input, shape index: {}]   ;;  %s1122_s2 = inlined_call_operand.vmem [shape: bf16[10,16], index: 2, kind: input, shape index: {}]   ;;  %s1123_s3 = inlined_call_operand.vmem [shape: bf16[8,2], index: 3, kind: input, shape index: {}]   ;;  %s1124_s4 = inlined_call_operand.vmem [shape: f32[1,2], index: 4, kind: input, shape index: {}]   ;;  %s1125_s5 = inlined_call_operand.vmem [shape: f32[1,2], index: 5, kind: input, shape index: {}]   ;;  %s1126_s6 = inlined_call_operand.vmem [shape: f32[2,1,1], index: 6, kind: output, shape index: {}]  }
   0x1 LB: > { %s876_s22 = sadd.s32 4294967295, %s1005_s21   ;;  %p880_p0 = scmp.ge.s32.totalorder %s1005_s21, 1  ;;  %s1005_s21 = sphi %s1044_s21, %s16_s21  }
   0x2   : > { %p222_p1 = scmp.lt.s32.totalorder %s1005_s21, 3 }
   0x4   : > { %p223_p2 = pnand %p880_p0, %p222_p1 }
   0x5   : > { %p255_p3 = scmp.lt.s32.totalorder (!%p223_p2), %s876_s22, 1 }
   0x6   : > { %226 = sbr.rel (%p223_p2) target bundleno = 658 (0x292), region = 44 }
   0xb   : > { %v273_v0 = vld [vmem:[%s1123_s3] sm:$0xf]  ;;  %vm281_vm0 = vcmask 1043456   ;;  %v1007_v1 = vmov 0.0   ;;  %s1128_s22 = smov (!%p255_p3, %s876_s22), 1  ;;  %vm1008_vm1 = vmmov 0  }
   0xc   : > { %922 = vmatprep.subr.bf16.mxu0 %v1007_v1  ;;  %928 = vmatprep.subr.bf16.mxu1 %v1007_v1  ;;  %v283_v2 = vsel %vm281_vm0, %v273_v0, 0  ;;  %s900_s25 = sshll.u32 %s1128_s22, 4  ;;  %vm277_vm2 = vcmask 64512   ;;  %v994_v27 = vld [vmem:[%s1122_s2] sm:$0x1f]   ;;  %vm520_vm3 = vcmask 130048   ;;  %s267_s16 = scalar_lea.vmem %s1126_s6, %s1128_s22 }
   0xd   : > { %923 = vmatpush3.bf16.msra.mxu0 %v283_v2  ;;  %929 = vmatpush3.bf16.msra.mxu1 %v283_v2  ;;  %s259_s28 = scalar_lea.vmem %s1120_s0, %s900_s25  ;;  %s264_s7 = scalar_lea.vmem %s1121_s1, %s900_s25  ;;  %vm799_vm4 = vcmask 15360   ;;  %vm801_vm5 = vcmask 9216   ;;  %vm815_vm6 = vcmask 0  }
   0xe   : > { %924 = vmatprep.mubr.msk.bf16.mxu0 %vm1008_vm1, %v1007_v1  ;;  %930 = vmatprep.mubr.msk.bf16.mxu1 %vm1008_vm1, %v1007_v1  ;;  %v269_v3 = vld [vmem:[%s259_s28] sm:$0xff]  ;;  %v270_v4 = vld [vmem:[%s259_s28 + $0x8] sm:$0xff] }
   0xf   : > { %934 = vmatprep.subr.bf16.mxu0 %v1007_v1  ;;  %940 = vmatprep.subr.bf16.mxu1 %v1007_v1  ;;  %v271_v5 = vld [vmem:[%s264_s7] sm:$0xff]  ;;  %v276_v6 = vpack.c.bf16 %v270_v4, %v269_v3  ;;  %v272_v7 = vld [vmem:[%s264_s7 + $0x8] sm:$0xff]  ;;  %v371_v9 = vmul.f32 %v269_v3, %v269_v3  ;;  %v372_v10 = vmul.f32 %v270_v4, %v270_v4 }
  0x10   : > { %v326_v8 = vpack.c.bf16 %v272_v7, %v271_v5  ;;  %v418_v11 = vmul.f32 %v271_v5, %v271_v5  ;;  %v419_v12 = vmul.f32 %v272_v7, %v272_v7  ;;  %v465_v15 = vmul.f32 %v271_v5, %v269_v3 }
  0x11   : > { %925 = vmatmul.mubr.msk.bf16.vlgmr.msra.gmra.mxu0 %vm277_vm2, %v276_v6  ;;  %v373_v13 = vpack.c.bf16 %v372_v10, %v371_v9  ;;  %v466_v16 = vmul.f32 %v272_v7, %v270_v4 }
  0x12   : > { %931 = vmatmul.mubr.msk.bf16.vlgmr.msra.gmra.mxu1 %vm277_vm2, %v326_v8  ;;  %935 = vmatpush3.bf16.msra.mxu0 %v283_v2  ;;  %v420_v14 = vpack.c.bf16 %v419_v12, %v418_v11  ;;  %v896_v12 = vld [vmem:[%s1124_s4] ss:$0 sm:$0xff] }
  0x13   : > { %941 = vmatpush3.bf16.msra.mxu1 %v283_v2  ;;  %936 = vmatprep.mubr.msk.bf16.mxu0 %vm1008_vm1, %v1007_v1  ;;  %v467_v17 = vpack.c.bf16 %v466_v16, %v465_v15 }
  0x14   : > { %942 = vmatprep.mubr.msk.bf16.mxu1 %vm1008_vm1, %v1007_v1  ;;  %946 = vmatprep.subr.bf16.mxu0 %v1007_v1 }
  0x15   : > { %952 = vmatprep.subr.bf16.mxu1 %v1007_v1 }
  0x19   : > { %937 = vmatmul.mubr.msk.bf16.vlgmr.msra.gmra.mxu0 %vm277_vm2, %v373_v13  ;;  %v897_v13 = vld [vmem:[%s1125_s5] ss:$0 sm:$0xff] }
  0x1a   : > { %943 = vmatmul.mubr.msk.bf16.vlgmr.msra.gmra.mxu1 %vm277_vm2, %v420_v14  ;;  %947 = vmatpush3.bf16.msra.mxu0 %v283_v2 }
  0x1b   : > { %948 = vmatprep.mubr.msk.bf16.mxu0 %vm1008_vm1, %v1007_v1  ;;  %958 = vmatprep.subr.bf16.mxu0 %v1007_v1 }
  0x1c   : > { %954 = vmatprep.mubr.msk.bf16.mxu1 %vm1008_vm1, %v1007_v1 }
  0x21   : > { %949 = vmatmul.mubr.msk.bf16.vlgmr.msra.gmra.mxu0 %vm277_vm2, %v467_v17 }
  0x22   : > { %960 = vmatprep.mubr.msk.bf16.mxu0 %vm1008_vm1, %v1007_v1 }
  0xd1   : > { %v319_v18 = vpop.f32.mrf.mxu0 }
  0xd2   : > { %v364_v19 = vpop.f32.mrf.mxu1 }
  0xd3   : > { %v926_v20 = vpop.f32.mrf.mxu0 }
  0xd4   : > { %v932_v21 = vpop.f32.mrf.mxu1 }
  0xd5   : > { %v322_v22 = vpop.f32.mrf.mxu0 }
  0xd6   : > { %v514_v23 = vpack.c.bf16 %v322_v22, %v319_v18  ;;  %v367_v24 = vpop.f32.mrf.mxu1 }
  0xd7   : > { %v567_v25 = vpack.c.bf16 %v367_v24, %v364_v19  ;;  %v927_v26 = vpop.f32.mrf.mxu0 }
  0xd8   : > { %v933_v28 = vpop.f32.mrf.mxu1  ;;  %953 = vmatpush3.bf16.msra.mxu1 %v514_v23 }
  0xd9   : > { %959 = vmatpush3.bf16.msra.mxu0 %v567_v25  ;;  %v411_v29 = vpop.f32.mrf.mxu0  ;;  %964 = vmatprep.subr.bf16.mxu1 %v1007_v1 }
  0xda   : > { %v458_v30 = vpop.f32.mrf.mxu1  ;;  %970 = vmatprep.subr.bf16.mxu0 %v1007_v1 }
  0xdb   : > { %v938_v31 = vpop.f32.mrf.mxu0  ;;  %955 = vmatmul.mubr.msk.bf16.vlgmr.msra.gmra.mxu1 %vm520_vm3, %v994_v27 }
  0xdc   : > { %v944_v32 = vpop.f32.mrf.mxu1  ;;  %961 = vmatmul.mubr.msk.bf16.vlgmr.msra.gmra.mxu0 %vm520_vm3, %v994_v27  ;;  %966 = vmatprep.mubr.msk.bf16.mxu1 %vm1008_vm1, %v1007_v1 }
  0xdd   : > { %v414_v33 = vpop.f32.mrf.mxu0  ;;  %972 = vmatprep.mubr.msk.bf16.mxu0 %vm1008_vm1, %v1007_v1 }
  0xde   : > { %v611_v34 = vpack.c.bf16 %v414_v33, %v411_v29  ;;  %v461_v35 = vpop.f32.mrf.mxu1 }
  0xdf   : > { %v655_v36 = vpack.c.bf16 %v461_v35, %v458_v30  ;;  %v939_v37 = vpop.f32.mrf.mxu0 }
  0xe0   : > { %v945_v38 = vpop.f32.mrf.mxu1  ;;  %965 = vmatpush3.bf16.msra.mxu1 %v611_v34 }
  0xe1   : > { %971 = vmatpush3.bf16.msra.mxu0 %v655_v36  ;;  %v505_v39 = vpop.f32.mrf.mxu0  ;;  %976 = vmatprep.subr.bf16.mxu1 %v1007_v1 }
  0xe3   : > { %v950_v40 = vpop.f32.mrf.mxu0  ;;  %967 = vmatmul.mubr.msk.bf16.vlgmr.msra.gmra.mxu1 %vm520_vm3, %v994_v27 }
  0xe4   : > { %973 = vmatmul.mubr.msk.bf16.vlgmr.msra.gmra.mxu0 %vm520_vm3, %v994_v27  ;;  %978 = vmatprep.mubr.msk.bf16.mxu1 %vm1008_vm1, %v1007_v1 }
  0xe5   : > { %v508_v41 = vpop.f32.mrf.mxu0 }
  0xe6   : > { %v699_v42 = vpack.c.bf16 %v508_v41, %v505_v39 }
  0xe7   : > { %v951_v43 = vpop.f32.mrf.mxu0 }
  0xe8   : > { %977 = vmatpush3.bf16.msra.mxu1 %v699_v42 }
  0xeb   : > { %979 = vmatmul.mubr.msk.bf16.vlgmr.msra.gmra.mxu1 %vm520_vm3, %v994_v27 }
 0x19b   : > { %v558_v44 = vpop.f32.mrf.mxu1 }
 0x19c   : > { %v602_v45 = vpop.f32.mrf.mxu0  ;;  %v565_v49 = vmul.f32 0.020408163, %v558_v44 }
 0x19d   : > { %v956_v46 = vpop.f32.mrf.mxu1  ;;  %v609_v51 = vmul.f32 0.020408163, %v602_v45 }
 0x19e   : > { %v962_v47 = vpop.f32.mrf.mxu0  ;;  %v743_v57 = vmul.f32 %v565_v49, %v565_v49  ;;  %v761_v39 = vmul.f32 2.0, %v565_v49 }
 0x19f   : > { %v561_v48 = vpop.f32.mrf.mxu1  ;;  %v749_v61 = vmul.f32 %v609_v51, %v609_v51  ;;  %v755_v21 = vmul.f32 %v609_v51, %v565_v49 }
 0x1a0   : > { %v605_v50 = vpop.f32.mrf.mxu0  ;;  %v566_v55 = vmul.f32 0.020408163, %v561_v48  ;;  %v763_v43 = vmul.f32 %v761_v39, %v609_v51 }
 0x1a1   : > { %v957_v52 = vpop.f32.mrf.mxu1  ;;  %v610_v59 = vmul.f32 0.020408163, %v605_v50  ;;  %v783_v8 = vadd.f32 %v749_v61, %v743_v57 }
 0x1a2   : > { %v963_v53 = vpop.f32.mrf.mxu0  ;;  %v744_v5 = vmul.f32 %v566_v55, %v566_v55  ;;  %v762_v41 = vmul.f32 2.0, %v566_v55  ;;  %v771_v48 = vadd.f32 %v896_v12, %v763_v43 }
 0x1a3   : > { %v646_v54 = vpop.f32.mrf.mxu1  ;;  %v750_v10 = vmul.f32 %v610_v59, %v610_v59  ;;  %v785_v22 = vadd.f32 %v896_v12, %v783_v8  ;;  %v756_v32 = vmul.f32 %v610_v59, %v566_v55 }
 0x1a4   : > { %v653_v56 = vmul.f32 0.020408163, %v646_v54  ;;  %v690_v58 = vpop.f32.mrf.mxu0  ;;  %v764_v45 = vmul.f32 %v762_v41, %v610_v59 }
 0x1a5   : > { %v697_v60 = vmul.f32 0.020408163, %v690_v58  ;;  %v968_v62 = vpop.f32.mrf.mxu1  ;;  %v784_v25 = vadd.f32 %v750_v10, %v744_v5 }
 0x1a6   : > { %v745_v63 = vsub.f32 %v653_v56, %v743_v57  ;;  %v974_v0 = vpop.f32.mrf.mxu0  ;;  %v772_v52 = vadd.f32 %v896_v12, %v764_v45 }
 0x1a7   : > { %v751_v1 = vsub.f32 %v697_v60, %v749_v61  ;;  %v649_v2 = vpop.f32.mrf.mxu1  ;;  %v786_v33 = vadd.f32 %v896_v12, %v784_v25 }
 0x1a8   : > { %v747_v3 = vmul.f32 1.0208334, %v745_v63  ;;  %v654_v4 = vmul.f32 0.020408163, %v649_v2  ;;  %v693_v6 = vpop.f32.mrf.mxu0 }
 0x1a9   : > { %v753_v7 = vmul.f32 1.0208334, %v751_v1  ;;  %v698_v9 = vmul.f32 0.020408163, %v693_v6  ;;  %v969_v11 = vpop.f32.mrf.mxu1 }
 0x1aa   : > { %v746_v14 = vsub.f32 %v654_v4, %v744_v5  ;;  %v975_v15 = vpop.f32.mrf.mxu0 }
 0x1ab   : > { %v787_v16 = vadd.f32 %v753_v7, %v747_v3  ;;  %v752_v17 = vsub.f32 %v698_v9, %v750_v10  ;;  %v734_v18 = vpop.f32.mrf.mxu1 }
 0x1ac   : > { %v748_v19 = vmul.f32 1.0208334, %v746_v14  ;;  %v741_v20 = vmul.f32 0.020408163, %v734_v18 }
 0x1ad   : > { %v789_v23 = vadd.f32 %v897_v13, %v787_v16  ;;  %v754_v24 = vmul.f32 1.0208334, %v752_v17  ;;  %v980_v26 = vpop.f32.mrf.mxu1 }
 0x1ae   : > { %v757_v29 = vsub.f32 %v741_v20, %v755_v21 }
 0x1af   : > { %v793_v27 = vmul.f32 %v789_v23, %v785_v22  ;;  %v788_v28 = vadd.f32 %v754_v24, %v748_v19  ;;  %v737_v30 = vpop.f32.mrf.mxu1 }
 0x1b0   : > { %v742_v31 = vmul.f32 0.020408163, %v737_v30  ;;  %v759_v38 = vmul.f32 1.0208334, %v757_v29 }
 0x1b1   : > { %995 = vrcp.f32 %v793_v27  ;;  %v790_v34 = vadd.f32 %v897_v13, %v788_v28  ;;  %v981_v35 = vpop.f32.mrf.mxu1 }
 0x1b2   : > { %v758_v36 = vsub.f32 %v742_v31, %v756_v32  ;;  %v773_v42 = vmul.f32 2.0, %v759_v38 }
 0x1b3   : > { %v794_v37 = vmul.f32 %v790_v34, %v786_v33 }
 0x1b4   : > { %v760_v40 = vmul.f32 1.0208334, %v758_v36  ;;  %v781_v46 = vadd.f32 %v897_v13, %v773_v42 }
 0x1b5   : > { %997 = vrcp.f32 %v794_v37 }
 0x1b6   : > { %v774_v44 = vmul.f32 2.0, %v760_v40  ;;  %v791_v53 = vmul.f32 %v781_v46, %v771_v48 }
 0x1b8   : > { %v782_v47 = vadd.f32 %v897_v13, %v774_v44 }
 0x1ba   : > { %v792_v54 = vmul.f32 %v782_v47, %v772_v52 }
 0x1be   : > { %v996_v50 = vpop.eup %995 }
 0x1bf   : > { %v796_v56 = vmul.f32 %v996_v50, %v791_v53 }
 0x1c1   : > { %v800_v58 = vsel %vm799_vm4, %v796_v56, 0.0 }
 0x1c2   : > { %v998_v57 = vpop.eup %997 }
 0x1c3   : > { %v798_v49 = vmul.f32 %v998_v57, %v792_v54 }
 0x1c5   : > { %v802_v60 = vsel %vm801_vm5, %v798_v49, 0.0 }
 0x1c6   : > { %v803_v55 = vadd.f32 %v802_v60, %v800_v58 }
 0x1c8   : > { %804 = vadd.xlane.f32.xlu0 %v803_v55 }
 0x251   : > { %v805_v51 = vpop.xlane.xlu0 %804 }
 0x252   : > { %v806_v61 = vrot.slane %v805_v51, 4 }
 0x254   : > { %v807_v59 = vadd.f32 %v806_v61, %v805_v51 }
 0x256   : > { %v808_v62 = vrot.slane %v807_v59, 2 }
 0x258   : > { %v809_v63 = vadd.f32 %v808_v62, %v807_v59 }
 0x25a   : > { %v810_v0 = vrot.slane %v809_v63, 1 }
 0x25c   : > { %v811_v1 = vadd.f32 %v810_v0, %v809_v63 }
 0x25e   : > { %982 = vpush %v811_v1 }
 0x28f   : > { %s983_s17 = spop %982 }
 0x290   : > { %v814_v2 = vstv %s983_s17 }
 0x291   : > { %816 = vst.msk [vmem:[%s267_s16] sm:$0x1] %vm815_vm6, %v814_v2 }
 0x292 PF: > { %s16_s21 = sadd.s32 1, %s1005_s21  }
 0x293   : > { %p13_p4 = scmp.ge.s32.totalorder %s16_s21, 4  }
 0x295   :  { %15 = sbr.rel (!%p13_p4) target bundleno = 1 (0x1), region = 77 }

</bundles_post_ra>
